<compile_context>
chip_gen: v5e
topology: v5e:2x2
jax: 0.10.0
libtpu: 0.0.40
codegen_flags: <defaults>
</compile_context>

<pallas_src>
import functools

import jax
import jax.numpy as jnp
from jax.experimental import pallas as pl
from jax.experimental.pallas import tpu as pltpu


# ----------------------------------------------------------------------------
# helpers
# ----------------------------------------------------------------------------

def _round_up(x, m):
    return ((x + m - 1) // m) * m


def _padded_tile_bytes(rows, cols, itemsize):
    """VMEM footprint of a (rows, cols) slab: lanes pad to 128, sublanes to
    8 (f32) / 16 (bf16) / 32 (int8)."""
    sub = 8 * max(1, 4 // int(itemsize))
    return int(itemsize) * _round_up(max(int(rows), 1), sub) * _round_up(max(int(cols), 1), 128)


def _downsampled_lengths(T, window, layers):
    lens, t = [], T
    for _ in range(layers):
        t = t // window
        lens.append(t)
    return lens


def _vmem_plan():
    """(block budget bytes, vmem_limit_bytes or None), generation-aware."""
    try:
        cap = int(getattr(pltpu.get_tpu_info(), "vmem_capacity_bytes", 0) or 0)
    except Exception:
        cap = 0
    if cap >= (96 << 20):          # v5e / v6e class: 128 MiB physical VMEM
        return 20 << 20, 48 << 20  # raise the scoped limit so the budget fits on v5e too
    return 12 << 20, None          # v7x (64 MiB physical, 32 MiB scoped) / unknown backend


def _choose_batch_block(B, per_batch_bytes, fixed_bytes, budget_bytes, max_bb=64):
    """Largest divisor of B whose padded footprint fits the budget; keep >= 2
    grid steps when B >= 2 so both v7x TensorCores get work (a grid step costs
    only ~0.35 us on single-TC chips, so this is essentially free there)."""
    avail = max(budget_bytes - fixed_bytes, per_batch_bytes)
    cap = max(1, min(max_bb, avail // max(int(per_batch_bytes), 1)))
    if B >= 2:
        cap = min(cap, max(1, B // 2))
    cap = int(min(cap, B))
    for bb in range(cap, 0, -1):
        if B % bb == 0:
            return bb
    return 1


# ----------------------------------------------------------------------------
# fused kernels (all downsampling layers in one kernel; grid over batch blocks)
# ----------------------------------------------------------------------------

def _conv_fused_kernel(x_ref, w_ref, *out_refs, window, layers, fuse_taps):
    """Circular Conv1d (k=3, pad=1, stride=window, no bias), all levels fused.

    x_ref : (bb, T, V)          level-0 input block
    w_ref : (3, V, V) f32       taps (torch weight[:, :, k].T stacked over k), or
            (3V, V) f32         when fuse_taps (single MXU push per level)
    out_refs[i] : (bb, T_i, V)  level-(i+1) output block
    """
    if fuse_taps:
        w_cat = w_ref[...]                       # (3V, V)
    else:
        w = w_ref[...]                           # (3, V, V)
        w0, w1, w2 = w[0], w[1], w[2]

    cur = x_ref[...]                             # (bb, T, V)
    bb = cur.shape[0]
    for lvl in range(layers):
        t_in, v = cur.shape[1], cur.shape[2]
        l_out = t_in // window
        m = bb * l_out
        xg = cur.reshape(bb, l_out, window, v)
        t1 = xg[:, :, 0, :].reshape(m, v)        # x[j*w]
        t2 = xg[:, :, 1, :].reshape(m, v)        # x[j*w + 1]
        tl = xg[:, :, window - 1, :]             # x[j*w + (w-1)]
        if l_out > 1:
            tl = jnp.roll(tl, shift=1, axis=1)   # -> x[(j*w - 1) mod T] (circular pad)
        t0 = tl.reshape(m, v)
        # Large-M MXU matmuls, f32 accumulation (weight stays f32; activations promoted).
        if fuse_taps:
            lhs = jnp.concatenate([t0, t1, t2], axis=-1)          # lane concat -> (m, 3V)
            acc = jnp.dot(lhs, w_cat, preferred_element_type=jnp.float32)
        else:
            acc = jnp.dot(t0, w0, preferred_element_type=jnp.float32)
            acc = acc + jnp.dot(t1, w1, preferred_element_type=jnp.float32)
            acc = acc + jnp.dot(t2, w2, preferred_element_type=jnp.float32)
        res = acc.reshape(bb, l_out, v).astype(out_refs[lvl].dtype)
        out_refs[lvl][...] = res                 # single lane-dense full-block store
        cur = res                                # feed next level; never leaves VMEM


def _pool_fused_kernel(x_ref, *out_refs, window, layers, method):
    """MaxPool1d / AvgPool1d (stride == window, floor/truncate), all levels fused."""
    cur = x_ref[...]                             # (bb, T, V)
    bb = cur.shape[0]
    inv_w = jnp.float32(1.0 / window)
    for lvl in range(layers):
        t_in, v = cur.shape[1], cur.shape[2]
        l_out = t_in // window
        xg = cur[:, : l_out * window, :].reshape(bb, l_out, window, v)
        if method == "max":
            res = jnp.max(xg, axis=2).astype(out_refs[lvl].dtype)
        else:  # 'avg' — accumulate in f32 even for bf16 storage
            res = (jnp.sum(xg.astype(jnp.float32), axis=2) * inv_w).astype(out_refs[lvl].dtype)
        out_refs[lvl][...] = res
        cur = res


# ----------------------------------------------------------------------------
# pallas_call wrappers (one call per method, all layers fused)
# ----------------------------------------------------------------------------

def _fused_conv_downsample(x, conv_weight_torch, window, layers):
    """x: (B, T, V); conv_weight_torch: (V, V, 3) torch Conv1d layout (Cout, Cin, K)."""
    B, T, V = x.shape
    # Keep the weight in float32 (matches torch master weights).
    w_kio = jnp.transpose(conv_weight_torch, (2, 1, 0)).astype(jnp.float32)   # (K, Cin, Cout)
    fuse_taps = (V % 128 == 0)                     # one MXU push per level when lane-aligned
    if fuse_taps:
        w_arg = w_kio.reshape(3 * V, V)
        w_spec = pl.BlockSpec((3 * V, V), lambda g: (0, 0))
    else:
        w_arg = w_kio
        w_spec = pl.BlockSpec((3, V, V), lambda g: (0, 0, 0))

    lens = _downsampled_lengths(T, window, layers)
    isz = jnp.dtype(x.dtype).itemsize
    budget, vlim = _vmem_plan()

    # Honest (lane/sublane padded) per-batch-element VMEM accounting:
    per_batch = (
        2 * _padded_tile_bytes(T, V, isz)                           # double-buffered input block
        + sum(2 * _padded_tile_bytes(li, V, isz) for li in lens)    # double-buffered outputs
        + 3 * _padded_tile_bytes(T, V, 4)                           # taps + f32 acc working set
    )
    fixed = 2 * 3 * _padded_tile_bytes(V, V, 4)                     # double-buffered f32 weight
    bb = _choose_batch_block(B, per_batch, fixed, budget)
    grid = (B // bb,)

    out_shape = tuple(jax.ShapeDtypeStruct((B, li, V), x.dtype) for li in lens)
    out_specs = tuple(pl.BlockSpec((bb, li, V), lambda g: (g, 0, 0)) for li in lens)
    in_specs = [pl.BlockSpec((bb, T, V), lambda g: (g, 0, 0)), w_spec]

    flops = 2 * 3 * V * V * B * sum(lens)
    bytes_acc = isz * (B * T * V + B * V * sum(lens)) + 4 * 3 * V * V

    kern = functools.partial(_conv_fused_kernel, window=window, layers=layers,
                             fuse_taps=fuse_taps)
    outs = pl.pallas_call(
        kern,
        out_shape=out_shape,
        grid=grid,
        in_specs=in_specs,
        out_specs=out_specs,
        compiler_params=pltpu.CompilerParams(dimension_semantics=("parallel",),
                                             vmem_limit_bytes=vlim),
        cost_estimate=pl.CostEstimate(flops=flops, transcendentals=0,
                                      bytes_accessed=bytes_acc),
    )(x, w_arg)
    return list(outs)


def _fused_pool_downsample(x, window, layers, method):
    B, T, V = x.shape
    lens = _downsampled_lengths(T, window, layers)
    isz = jnp.dtype(x.dtype).itemsize
    budget, vlim = _vmem_plan()

    per_batch = (
        2 * _padded_tile_bytes(T, V, isz)
        + sum(2 * _padded_tile_bytes(li, V, isz) for li in lens)
        + 2 * _padded_tile_bytes(T, V, 4)                           # f32 working set
    )
    bb = _choose_batch_block(B, per_batch, 0, budget)
    grid = (B // bb,)

    out_shape = tuple(jax.ShapeDtypeStruct((B, li, V), x.dtype) for li in lens)
    out_specs = tuple(pl.BlockSpec((bb, li, V), lambda g: (g, 0, 0)) for li in lens)
    in_specs = [pl.BlockSpec((bb, T, V), lambda g: (g, 0, 0))]

    flops = window * V * B * sum(lens)
    bytes_acc = isz * (B * T * V + B * V * sum(lens))

    kern = functools.partial(_pool_fused_kernel, window=window, layers=layers, method=method)
    outs = pl.pallas_call(
        kern,
        out_shape=out_shape,
        grid=grid,
        in_specs=in_specs,
        out_specs=out_specs,
        compiler_params=pltpu.CompilerParams(dimension_semantics=("parallel",),
                                             vmem_limit_bytes=vlim),
        cost_estimate=pl.CostEstimate(flops=flops, transcendentals=0,
                                      bytes_accessed=bytes_acc),
    )(x)
    return list(outs)


# ----------------------------------------------------------------------------
# MultiScaleProcessor forward
# ----------------------------------------------------------------------------

def multi_scale_processor(x_enc, x_mark_enc, *, down_sampling_method,
                          down_sampling_window, down_sampling_layers,
                          conv_weight=None):
    """x_enc: (B, T, V). conv_weight: torch layout (Cout, Cin, 3) for 'conv'.

    Returns (list of (B, T_i, V) arrays, list of subsampled marks or None),
    matching MultiScaleProcessor.forward.
    """
    B, T, V = x_enc.shape
    w = down_sampling_window
    L = down_sampling_layers

    x_list = [x_enc]                                     # level 0 == original
    if L > 0:
        if down_sampling_method == "conv":
            assert conv_weight is not None, "conv method needs conv_weight"
            # TODO(synk): general conv path for window==1 / T not divisible by window**layers.
            assert w >= 2 and T >= w ** L and T % (w ** L) == 0, \
                "conv path requires window>=2 and T divisible by window**layers"
            x_list.extend(_fused_conv_downsample(x_enc, conv_weight, w, L))
        elif down_sampling_method in ("max", "avg"):
            lens = _downsampled_lengths(T, w, L)
            assert all(li >= 1 for li in lens), "sequence too short for requested layers"
            x_list.extend(_fused_pool_downsample(x_enc, w, L, down_sampling_method))
        else:
            raise ValueError(f"Unsupported down sampling method: {down_sampling_method}")

    if x_mark_enc is None:
        return x_list, None

    # Mark subsampling is plain strided slicing; left to XLA (no kernel needed).
    mark_list = [x_mark_enc]
    cur_mark = x_mark_enc
    for _ in range(L):
        slice_length = (cur_mark.shape[1] // w) * w
        cur_mark = cur_mark[:, :slice_length:w, :]
        mark_list.append(cur_mark)
    return x_list, mark_list


# ----------------------------------------------------------------------------
# Pure-JAX references for validation
# ----------------------------------------------------------------------------

def _ref_conv_layer(x_btv, w_torch, window):
    """torch Conv1d k=3, circular pad=1, stride=window, no bias."""
    B, T, V = x_btv.shape
    xt = jnp.transpose(x_btv, (0, 2, 1))                  # (B, Cin, T)
    xp = jnp.concatenate([xt[:, :, -1:], xt, xt[:, :, :1]], axis=-1)
    l_out = (T - 1) // window + 1
    outs = []
    for j in range(l_out):
        seg = xp[:, :, j * window: j * window + 3]        # (B, Cin, 3)
        outs.append(jnp.einsum("bik,oik->bo", seg, w_torch))
    out = jnp.stack(outs, axis=-1)                        # (B, Cout, L_out)
    return jnp.transpose(out, (0, 2, 1))


def _ref_pool_layer(x_btv, window, method):
    B, T, V = x_btv.shape
    lo = T // window
    xw = x_btv[:, : lo * window, :].reshape(B, lo, window, V)
    return jnp.max(xw, axis=2) if method == "max" else jnp.mean(xw, axis=2)


if __name__ == "__main__":
    key = jax.random.PRNGKey(0)
    B, T, V, N_MARK = 4, 16, 8, 3
    window, layers = 2, 2

    k1, k2, k3, k4, k5 = jax.random.split(key, 5)
    x_enc = jax.random.normal(k1, (B, T, V), dtype=jnp.float32)
    x_mark_enc = jax.random.normal(k2, (B, T, N_MARK), dtype=jnp.float32)
    # Conv1d weight (torch layout: (Cout, Cin, K=3)), deterministic init.
    w_torch = (jax.random.uniform(k3, (V, V, 3), dtype=jnp.float32) - 0.5) * 0.5

    # --- conv method (fused Pallas kernel) ---
    x_list, mark_list = multi_scale_processor(
        x_enc, x_mark_enc,
        down_sampling_method="conv",
        down_sampling_window=window,
        down_sampling_layers=layers,
        conv_weight=w_torch,
    )
    jax.block_until_ready(x_list[-1])

    ref = x_enc
    assert jnp.allclose(x_list[0], x_enc)
    for lvl in range(1, layers + 1):
        ref = _ref_conv_layer(ref, w_torch, window)
        assert x_list[lvl].shape == ref.shape, (x_list[lvl].shape, ref.shape)
        assert jnp.allclose(x_list[lvl], ref, atol=1e-4, rtol=1e-4), lvl

    # Mark subsampling semantics (matches the torch slice_length logic).
    assert mark_list[0].shape == (B, T, N_MARK)
    assert mark_list[1].shape == (B, T // window, N_MARK)
    assert mark_list[2].shape == (B, T // (window * window), N_MARK)

    # --- avg / max methods (fused pooling kernel) ---
    for method in ("avg", "max"):
        xl, ml = multi_scale_processor(
            x_enc, None,
            down_sampling_method=method,
            down_sampling_window=window,
            down_sampling_layers=layers,
        )
        jax.block_until_ready(xl[-1])
        assert ml is None
        r = x_enc
        for lvl in range(1, layers + 1):
            r = _ref_pool_layer(r, window, method)
            assert jnp.allclose(xl[lvl], r, atol=1e-6, rtol=1e-6), (method, lvl)

    # --- pooling with non-divisible T (truncation, like torch floor mode) ---
    x_odd = jax.random.normal(k4, (2, 18, V), dtype=jnp.float32)
    xl, _ = multi_scale_processor(
        x_odd, None, down_sampling_method="max",
        down_sampling_window=4, down_sampling_layers=2,
    )
    jax.block_until_ready(xl[-1])
    r = x_odd
    for lvl in range(1, 3):
        r = _ref_pool_layer(r, 4, "max")
        assert xl[lvl].shape == r.shape
        assert jnp.allclose(xl[lvl], r, atol=1e-6, rtol=1e-6), lvl

    # --- bf16 activation path (weights stay f32, f32 accumulation inside) ---
    xb_list, _ = multi_scale_processor(
        x_enc.astype(jnp.bfloat16), None,
        down_sampling_method="conv",
        down_sampling_window=window,
        down_sampling_layers=layers,
        conv_weight=w_torch,
    )
    jax.block_until_ready(xb_list[-1])
    ref = x_enc
    for lvl in range(1, layers + 1):
        ref = _ref_conv_layer(ref, w_torch, window)
        assert xb_list[lvl].dtype == jnp.bfloat16
        diff = jnp.max(jnp.abs(xb_list[lvl].astype(jnp.float32) - ref))
        assert diff < 0.1, (lvl, float(diff))

    # --- lane-aligned V (fused single-matmul tap path) ---
    V2 = 128
    x_big = jax.random.normal(k5, (2, 8, V2), dtype=jnp.float32)
    w_big = (jax.random.uniform(k3, (V2, V2, 3), dtype=jnp.float32) - 0.5) * 0.1
    xl, _ = multi_scale_processor(
        x_big, None, down_sampling_method="conv",
        down_sampling_window=2, down_sampling_layers=1, conv_weight=w_big,
    )
    jax.block_until_ready(xl[-1])
    ref = _ref_conv_layer(x_big, w_big, 2)
    assert jnp.allclose(xl[1], ref, atol=1e-3, rtol=1e-3)

    print("KERNEL_OK")
</pallas_src>

<mosaic_0001>
module attributes {stable_mosaic.version = 11 : i64} {
  func.func @_conv_fused_kernel(%arg0: i32, %arg1: memref<2x16x8xf32, #tpu.memory_space<vmem>>, %arg2: memref<3x8x8xf32, #tpu.memory_space<vmem>>, %arg3: memref<2x8x8xf32, #tpu.memory_space<vmem>>, %arg4: memref<2x4x8xf32, #tpu.memory_space<vmem>>) attributes {dimension_semantics = [#tpu.dimension_semantics<parallel>], iteration_bounds = array<i64: 2>, scalar_prefetch = 0 : i64, scratch_operands = 0 : i64, tpu.core_type = #tpu.core_type<tc>, window_params = [{transform_indices = @transform_0, window_bounds = array<i64: 2, 16, 8>}, {pipeline_mode = #tpu.pipeline_mode<synchronous>, transform_indices = @transform_1, window_bounds = array<i64: 3, 8, 8>}, {transform_indices = @transform_2, window_bounds = array<i64: 2, 8, 8>}, {transform_indices = @transform_3, window_bounds = array<i64: 2, 4, 8>}]} {
    %c0 = arith.constant 0 : index
    %c0_0 = arith.constant 0 : index
    %c0_1 = arith.constant 0 : index
    %0 = vector.load %arg2[%c0, %c0_0, %c0_1] : memref<3x8x8xf32, #tpu.memory_space<vmem>>, vector<3x8x8xf32>
    %1 = vector.extract_strided_slice %0 {offsets = [0, 0, 0], sizes = [1, 8, 8], strides = [1, 1, 1]} : vector<3x8x8xf32> to vector<1x8x8xf32>
    %2 = vector.shape_cast %1 : vector<1x8x8xf32> to vector<8x8xf32>
    %3 = vector.extract_strided_slice %0 {offsets = [1, 0, 0], sizes = [1, 8, 8], strides = [1, 1, 1]} : vector<3x8x8xf32> to vector<1x8x8xf32>
    %4 = vector.shape_cast %3 : vector<1x8x8xf32> to vector<8x8xf32>
    %5 = vector.extract_strided_slice %0 {offsets = [2, 0, 0], sizes = [1, 8, 8], strides = [1, 1, 1]} : vector<3x8x8xf32> to vector<1x8x8xf32>
    %6 = vector.shape_cast %5 : vector<1x8x8xf32> to vector<8x8xf32>
    %c0_2 = arith.constant 0 : index
    %c0_3 = arith.constant 0 : index
    %c0_4 = arith.constant 0 : index
    %7 = vector.load %arg1[%c0_2, %c0_3, %c0_4] : memref<2x16x8xf32, #tpu.memory_space<vmem>>, vector<2x16x8xf32>
    %8 = vector.shape_cast %7 : vector<2x16x8xf32> to vector<2x8x2x8xf32>
    %9 = vector.extract_strided_slice %8 {offsets = [0, 0, 0, 0], sizes = [2, 8, 1, 8], strides = [1, 1, 1, 1]} : vector<2x8x2x8xf32> to vector<2x8x1x8xf32>
    %10 = vector.shape_cast %9 : vector<2x8x1x8xf32> to vector<2x8x8xf32>
    %11 = vector.shape_cast %10 : vector<2x8x8xf32> to vector<16x8xf32>
    %12 = vector.extract_strided_slice %8 {offsets = [0, 0, 1, 0], sizes = [2, 8, 1, 8], strides = [1, 1, 1, 1]} : vector<2x8x2x8xf32> to vector<2x8x1x8xf32>
    %13 = vector.shape_cast %12 : vector<2x8x1x8xf32> to vector<2x8x8xf32>
    %14 = vector.shape_cast %13 : vector<2x8x8xf32> to vector<16x8xf32>
    %15 = vector.extract_strided_slice %8 {offsets = [0, 0, 1, 0], sizes = [2, 8, 1, 8], strides = [1, 1, 1, 1]} : vector<2x8x2x8xf32> to vector<2x8x1x8xf32>
    %16 = vector.shape_cast %15 : vector<2x8x1x8xf32> to vector<2x8x8xf32>
    %17 = vector.extract_strided_slice %16 {offsets = [0, 7, 0], sizes = [2, 1, 8], strides = [1, 1, 1]} : vector<2x8x8xf32> to vector<2x1x8xf32>
    %18 = vector.extract_strided_slice %16 {offsets = [0, 0, 0], sizes = [2, 7, 8], strides = [1, 1, 1]} : vector<2x8x8xf32> to vector<2x7x8xf32>
    %19 = tpu.concatenate %17, %18 in 1 : vector<2x1x8xf32>, vector<2x7x8xf32> -> vector<2x8x8xf32>
    %20 = vector.shape_cast %19 : vector<2x8x8xf32> to vector<16x8xf32>
    %cst = arith.constant dense<0.000000e+00> : vector<16x8xf32>
    %21 = tpu.matmul %20, %2, %cst {dimension_numbers = #tpu.dot_dimension_numbers<[1], [0], [0], [1], [0, 0, 1, 1], [], []>} : vector<16x8xf32>, vector<8x8xf32>, vector<16x8xf32> -> vector<16x8xf32>
    %cst_5 = arith.constant dense<0.000000e+00> : vector<16x8xf32>
    %22 = tpu.matmul %11, %4, %cst_5 {dimension_numbers = #tpu.dot_dimension_numbers<[1], [0], [0], [1], [0, 0, 1, 1], [], []>} : vector<16x8xf32>, vector<8x8xf32>, vector<16x8xf32> -> vector<16x8xf32>
    %23 = arith.addf %21, %22 : vector<16x8xf32>
    %cst_6 = arith.constant dense<0.000000e+00> : vector<16x8xf32>
    %24 = tpu.matmul %14, %6, %cst_6 {dimension_numbers = #tpu.dot_dimension_numbers<[1], [0], [0], [1], [0, 0, 1, 1], [], []>} : vector<16x8xf32>, vector<8x8xf32>, vector<16x8xf32> -> vector<16x8xf32>
    %25 = arith.addf %23, %24 : vector<16x8xf32>
    %26 = vector.shape_cast %25 : vector<16x8xf32> to vector<2x8x8xf32>
    %c0_7 = arith.constant 0 : index
    %c0_8 = arith.constant 0 : index
    %c0_9 = arith.constant 0 : index
    %27 = vector.load %arg3[%c0_7, %c0_8, %c0_9] : memref<2x8x8xf32, #tpu.memory_space<vmem>>, vector<2x8x8xf32>
    tpu.vector_store %arg3[%c0_7, %c0_8, %c0_9], %26 {strides = array<i32>} : memref<2x8x8xf32, #tpu.memory_space<vmem>>, vector<2x8x8xf32>,
    %28 = vector.shape_cast %26 : vector<2x8x8xf32> to vector<2x4x2x8xf32>
    %29 = vector.extract_strided_slice %28 {offsets = [0, 0, 0, 0], sizes = [2, 4, 1, 8], strides = [1, 1, 1, 1]} : vector<2x4x2x8xf32> to vector<2x4x1x8xf32>
    %30 = vector.shape_cast %29 : vector<2x4x1x8xf32> to vector<2x4x8xf32>
    %31 = vector.shape_cast %30 : vector<2x4x8xf32> to vector<8x8xf32>
    %32 = vector.extract_strided_slice %28 {offsets = [0, 0, 1, 0], sizes = [2, 4, 1, 8], strides = [1, 1, 1, 1]} : vector<2x4x2x8xf32> to vector<2x4x1x8xf32>
    %33 = vector.shape_cast %32 : vector<2x4x1x8xf32> to vector<2x4x8xf32>
    %34 = vector.shape_cast %33 : vector<2x4x8xf32> to vector<8x8xf32>
    %35 = vector.extract_strided_slice %28 {offsets = [0, 0, 1, 0], sizes = [2, 4, 1, 8], strides = [1, 1, 1, 1]} : vector<2x4x2x8xf32> to vector<2x4x1x8xf32>
    %36 = vector.shape_cast %35 : vector<2x4x1x8xf32> to vector<2x4x8xf32>
    %37 = vector.extract_strided_slice %36 {offsets = [0, 3, 0], sizes = [2, 1, 8], strides = [1, 1, 1]} : vector<2x4x8xf32> to vector<2x1x8xf32>
    %38 = vector.extract_strided_slice %36 {offsets = [0, 0, 0], sizes = [2, 3, 8], strides = [1, 1, 1]} : vector<2x4x8xf32> to vector<2x3x8xf32>
    %39 = tpu.concatenate %37, %38 in 1 : vector<2x1x8xf32>, vector<2x3x8xf32> -> vector<2x4x8xf32>
    %40 = vector.shape_cast %39 : vector<2x4x8xf32> to vector<8x8xf32>
    %cst_10 = arith.constant dense<0.000000e+00> : vector<8x8xf32>
    %41 = tpu.matmul %40, %2, %cst_10 {dimension_numbers = #tpu.dot_dimension_numbers<[1], [0], [0], [1], [0, 0, 1, 1], [], []>} : vector<8x8xf32>, vector<8x8xf32>, vector<8x8xf32> -> vector<8x8xf32>
    %cst_11 = arith.constant dense<0.000000e+00> : vector<8x8xf32>
    %42 = tpu.matmul %31, %4, %cst_11 {dimension_numbers = #tpu.dot_dimension_numbers<[1], [0], [0], [1], [0, 0, 1, 1], [], []>} : vector<8x8xf32>, vector<8x8xf32>, vector<8x8xf32> -> vector<8x8xf32>
    %43 = arith.addf %41, %42 : vector<8x8xf32>
    %cst_12 = arith.constant dense<0.000000e+00> : vector<8x8xf32>
    %44 = tpu.matmul %34, %6, %cst_12 {dimension_numbers = #tpu.dot_dimension_numbers<[1], [0], [0], [1], [0, 0, 1, 1], [], []>} : vector<8x8xf32>, vector<8x8xf32>, vector<8x8xf32> -> vector<8x8xf32>
    %45 = arith.addf %43, %44 : vector<8x8xf32>
    %46 = vector.shape_cast %45 : vector<8x8xf32> to vector<2x4x8xf32>
    %c0_13 = arith.constant 0 : index
    %c0_14 = arith.constant 0 : index
    %c0_15 = arith.constant 0 : index
    %47 = vector.load %arg4[%c0_13, %c0_14, %c0_15] : memref<2x4x8xf32, #tpu.memory_space<vmem>>, vector<2x4x8xf32>
    tpu.vector_store %arg4[%c0_13, %c0_14, %c0_15], %46 {strides = array<i32>} : memref<2x4x8xf32, #tpu.memory_space<vmem>>, vector<2x4x8xf32>,
    return
  }
  func.func @transform_0(%arg0: i32) -> (i32, i32, i32) {
    %c0_i32 = arith.constant 0 : i32
    %c0_i32_0 = arith.constant 0 : i32
    %c0_i32_1 = arith.constant 0 : i32
    return %arg0, %c0_i32, %c0_i32_0 : i32, i32, i32
  }
  func.func @transform_1(%arg0: i32) -> (i32, i32, i32) {
    %c0_i32 = arith.constant 0 : i32
    %c0_i32_0 = arith.constant 0 : i32
    %c0_i32_1 = arith.constant 0 : i32
    %c0_i32_2 = arith.constant 0 : i32
    return %c0_i32, %c0_i32_0, %c0_i32_1 : i32, i32, i32
  }
  func.func @transform_2(%arg0: i32) -> (i32, i32, i32) {
    %c0_i32 = arith.constant 0 : i32
    %c0_i32_0 = arith.constant 0 : i32
    %c0_i32_1 = arith.constant 0 : i32
    return %arg0, %c0_i32, %c0_i32_0 : i32, i32, i32
  }
  func.func @transform_3(%arg0: i32) -> (i32, i32, i32) {
    %c0_i32 = arith.constant 0 : i32
    %c0_i32_0 = arith.constant 0 : i32
    %c0_i32_1 = arith.constant 0 : i32
    return %arg0, %c0_i32, %c0_i32_0 : i32, i32, i32
  }
}

</mosaic_0001>

<bundles_post_ra>
// kernel: tpu_custom_call.1
= control target key start
LH: loop header
LB: loop body
LE: loop exit
PB: predicated region body
PF: predicated region fallthrough
CT: control target
= control target key end

     0   :  { %9 = vsyncpa [#allocation3], 0  ;;  %s1045_s0 = inlined_call_operand.vmem [shape: f32[4,16,8], index: 0, kind: input, shape index: {}]   ;;  %s1046_s1 = inlined_call_operand.vmem [shape: f32[3,8,8], index: 1, kind: input, shape index: {}]   ;;  %s1047_s2 = inlined_call_operand.hbm [shape: f32[4,8,8], index: 2, kind: output, shape index: {0}]   ;;  %s1048_s3 = inlined_call_operand.hbm [shape: f32[4,4,8], index: 3, kind: output, shape index: {1}]  }
   0x1   :  { %11 = vsyncpa [#allocation3 + $0x1], 0 }
   0x2   :  { %12 = vsyncpa [#allocation5], 0 }
   0x3   :  { %14 = vsyncpa [#allocation5 + $0x1], 0  ;;  %s841_s12 = smov 0   ;;  %s843_s13 = smov 0  }
   0x4   :  { %s845_s14 = smov 0   ;;  %s847_s15 = smov 0  }
   0x5 LB: > { %s862_s16 = sadd.s32 4294967295, %s815_s15   ;;  %s644_s17 = sadd.s32 4294967294, %s815_s15   ;;  %s815_s15 = sphi %s847_s15, %s1054_s15   ;;  %s811_s14 = sphi %s845_s14, %s1053_s14   ;;  %s807_s13 = sphi %s843_s13, %s1052_s13   ;;  %s803_s12 = sphi %s841_s12, %s1051_s12  }
   0x6   : > { %s866_s18 = sadd.s32 1, %s815_s15   ;;  %s74_s19 = sadd.s32 1, %s811_s14 }
   0x7   : > { %s71_s20 = ssub.s32 %s815_s15, %s866_s18  ;;  %p84_p0 = scmp.ne.s32.totalorder %s811_s14, %s807_s13 }
   0x8   : > { %p72_p1 = scmp.eq.s32.totalorder %s71_s20, 0  ;;  %p85_p2 = scmp.eq.s32.totalorder %s862_s16, 1 }
   0x9   : > { %p90_p3 = scmp.ne.s32.totalorder %s807_s13, %s803_s12  ;;  %p91_p4 = scmp.eq.s32.totalorder %s644_s17, 1 }
   0xa   : > { %s877_s21 = scalar_select %p72_p1, %s811_s14, %s74_s19  }
   0xb   : > { %p879_p5 = por %p85_p2, %p84_p0  ;;  %p883_p6 = por %p91_p4, %p90_p3 }
   0xc   : > { %p647_p7 = scmp.ge.s32.totalorder %s815_s15, 1  ;;  %p148_p8 = scmp.lt.s32.totalorder %s815_s15, 3 }
   0xe   : > { %p149_p9 = pnand %p647_p7, %p148_p8 }
   0xf   : > { %s650_s26 = sshll.u32 (!%p149_p9), %s862_s16, 1  ;;  %s964_s8 = sand.u32 (!%p149_p9), 1, %s807_s13  }
  0x10   : > { %152 = sbr.rel (%p149_p9) target bundleno = 337 (0x151), region = 28  ;;  %p179_p10 = scmp.lt.s32.totalorder (!%p149_p9), %s650_s26, 3 }
  0x11   : > { %s648_s9 = sshll.u32 (!%p149_p9), %s964_s8, 4  ;;  %s671_s11 = sshll.u32 (!%p149_p9), %s862_s16, 4 }
  0x12   : > { %s967_s10 = scalar_lea.vmem (!%p149_p9), [#allocation2], %s648_s9  ;;  %s528_s20 = scalar_lea.hbm (!%p149_p9), %s1047_s2, %s671_s11 }
  0x13   : > { %s529_s24 = sshll.u32 (!%p149_p9), %s967_s10, 4  ;;  %s531_s25 = sshll.u32 (!%p149_p9), %s528_s20, 4  ;;  %s530_s24 = int_to_ptr.vmem [resolvable:$true] %s529_s24  ;;  %s532_s25 = int_to_ptr.hbm [resolvable:$true] %s531_s25 }
  0x14   : > { %s735_s27 = sshra.s32 (!%p149_p9), %s532_s25, 4  ;;  %s736_s27 = int_to_ptr.hbm [resolvable:$true] %s735_s27 }
  0x15   : > { %v189_v0 = vld [vmem:[%s1046_s1 + $0x10] sm:$0xff]  ;;  %v188_v1 = vld [vmem:[%s1046_s1 + $0x8] sm:$0xff]  ;;  %v187_v2 = vld [vmem:[%s1046_s1] sm:$0xff]  ;;  %s1056_s26 = smov (!%p179_p10, %s650_s26), 3  ;;  %vm228_vm0 = vcmask 1042434   ;;  %vm230_vm1 = vcmask 1043459   ;;  %p742_p0 = scmp.lt.s32.totalorder %s736_s27, %s1047_s2 }
  0x16   : > { %372 = vmatpush.msra.mxu2 %v189_v0  ;;  %302 = vmatpush.msra.mxu0 %v188_v1  ;;  %s670_s4 = sshll.u32 %s1056_s26, 4  ;;  %vm232_vm2 = vcmask 1044484   ;;  %vm234_vm3 = vcmask 1045509   ;;  %vm236_vm4 = vcmask 1046534   ;;  %vm238_vm5 = vcmask 1047559   ;;  %s512_s26 = scalar_lea.sflag [#allocation3], %s964_s8 }
  0x17   : > { %442 = vmatpush.msra.mxu3 %v188_v1  ;;  %331 = vmatpush.msra.mxu1 %v187_v2  ;;  %s902_s7 = scalar_lea.vmem %s1045_s0, %s670_s4  ;;  %vm267_vm6 = vcmask 1041409   ;;  %vm282_vm7 = vcmask 64512   ;;  %vm248_vm8 = vcmask 1040384   ;;  %s737_s28 = scalar_lea.hbm %s736_s27, 16 }
  0x18   : > { %499 = vmatpush.msrb.mxu0 %v189_v0  ;;  %v190_v3 = vld [vmem:[%s902_s7] sm:$0xff]  ;;  %v191_v4 = vld [vmem:[%s902_s7 + $0x8] sm:$0xff]  ;;  %v907_v17 = vld [vmem:[%s902_s7 + $0x10] sm:$0xff]  ;;  %p738_p11 = scmp.ne.s32.totalorder %s736_s27, %s737_s28  ;;  %s741_s4 = scalar_lea.hbm %s1047_s2, 32 }
  0x19   : > { %470 = vmatpush.msrb.mxu3 %v187_v2  ;;  %v198_v5 = vrot.slane %v190_v3, 2  ;;  %v199_v6 = vrot.slane %v190_v3, 4  ;;  %v200_v7 = vrot.slane %v190_v3, 6  ;;  %v201_v8 = vrot.slane %v191_v4, 2  ;;  %v193_v33 = vld [vmem:[%s902_s7 + $0x18] sm:$0xff]  ;;  %p743_p1 = scmp.lt.s32.totalorder %s741_s4, %s737_s28 }
  0x1a   : > { %v202_v9 = vrot.slane %v191_v4, 4  ;;  %v203_v10 = vrot.slane %v191_v4, 6  ;;  %v214_v11 = vperm.slane %v190_v3, 1  ;;  %v218_v12 = vperm.slane %v191_v4, 1  ;;  %p739_p12 = pnand %p738_p11, %p879_p5 }
  0x1b   : > { %v215_v13 = vperm.slane %v198_v5, 1  ;;  %v216_v14 = vperm.slane %v199_v6, 1  ;;  %v217_v15 = vperm.slane %v200_v7, 1  ;;  %v219_v16 = vperm.slane %v201_v8, 1  ;;  %p744_p2 = por %p743_p1, %p742_p0 }
  0x1c   : > { %v210_v18 = vperm.slane %v203_v10, 1  ;;  %v220_v19 = vperm.slane %v202_v9, 1  ;;  %v251_v20 = vperm.slane %v190_v3, 0  ;;  %v252_v21 = vperm.slane %v198_v5, 0  ;;  %p740_p13 = pneg %p739_p12 }
  0x1d   : > { %v339_v22 = vsel %vm267_vm6, %v215_v13, %v214_v11  ;;  %v253_v23 = vperm.slane %v199_v6, 0  ;;  %v254_v24 = vperm.slane %v200_v7, 0  ;;  %v255_v25 = vperm.slane %v191_v4, 0 }
  0x1e   : > { %v340_v26 = vsel %vm228_vm0, %v216_v14, %v339_v22  ;;  %v256_v27 = vperm.slane %v201_v8, 0  ;;  %v257_v28 = vperm.slane %v202_v9, 0  ;;  %v258_v29 = vperm.slane %v203_v10, 0  ;;  %p745_p3 = pnand %p744_p2, %p740_p13 }
  0x1f   : > { %v341_v30 = vsel %vm230_vm1, %v217_v15, %v340_v26  ;;  %v268_v31 = vsel %vm267_vm6, %v252_v21, %v251_v20  ;;  %v229_v32 = vsel %vm228_vm0, %v215_v13, %v214_v11  ;;  %v204_v34 = vrot.slane %v907_v17, 2 }
  0x20   : > { %v342_v35 = vsel %vm232_vm2, %v218_v12, %v341_v30  ;;  %v269_v36 = vsel %vm228_vm0, %v253_v23, %v268_v31  ;;  %v231_v37 = vsel %vm230_vm1, %v216_v14, %v229_v32  ;;  %v205_v38 = vrot.slane %v907_v17, 4 }
  0x21   : > { %v343_v39 = vsel %vm234_vm3, %v219_v16, %v342_v35  ;;  %v270_v40 = vsel %vm230_vm1, %v254_v24, %v269_v36  ;;  %v233_v41 = vsel %vm232_vm2, %v217_v15, %v231_v37  ;;  %v206_v42 = vrot.slane %v907_v17, 6 }
  0x22   : > { %v344_v43 = vsel %vm236_vm4, %v220_v19, %v343_v39  ;;  %v271_v44 = vsel %vm232_vm2, %v255_v25, %v270_v40  ;;  %v235_v45 = vsel %vm234_vm3, %v218_v12, %v233_v41  ;;  %v207_v46 = vrot.slane %v193_v33, 2 }
  0x23   : > { %v345_v47 = vsel %vm238_vm5, %v210_v18, %v344_v43  ;;  %v272_v48 = vsel %vm234_vm3, %v256_v27, %v271_v44  ;;  %v237_v49 = vsel %vm236_vm4, %v219_v16, %v235_v45  ;;  %v208_v50 = vrot.slane %v193_v33, 4 }
  0x24   : > { %657 = vmatmul.msk.f32.vlgmr.msra.gmra.mxu2 %vm282_vm7, %v345_v47  ;;  %v273_v51 = vsel %vm236_vm4, %v257_v28, %v272_v48  ;;  %v239_v52 = vsel %vm238_vm5, %v220_v19, %v237_v49  ;;  %v209_v53 = vrot.slane %v193_v33, 6  ;;  %v221_v54 = vperm.slane %v907_v17, 1 }
  0x25   : > { %v274_v55 = vsel %vm238_vm5, %v258_v29, %v273_v51  ;;  %v249_v56 = vsel %vm248_vm8, %v210_v18, %v239_v52  ;;  %v222_v57 = vperm.slane %v204_v34, 1  ;;  %v223_v58 = vperm.slane %v205_v38, 1 }
  0x26   : > { %653 = vmatmul.msk.f32.vlgmr.msra.gmra.mxu0 %vm282_vm7, %v274_v55  ;;  %655 = vmatmul.msk.f32.vlgmr.msra.gmra.mxu1 %vm282_vm7, %v249_v56  ;;  %v224_v59 = vperm.slane %v206_v42, 1  ;;  %v225_v60 = vperm.slane %v193_v33, 1  ;;  %v226_v61 = vperm.slane %v207_v46, 1  ;;  %v259_v63 = vperm.slane %v907_v17, 0 }
  0x27   : > { %v346_v62 = vsel %vm267_vm6, %v222_v57, %v221_v54  ;;  %v260_v0 = vperm.slane %v204_v34, 0  ;;  %v227_v1 = vperm.slane %v208_v50, 1  ;;  %v261_v3 = vperm.slane %v205_v38, 0 }
  0x28   : > { %v347_v2 = vsel %vm228_vm0, %v223_v58, %v346_v62  ;;  %v262_v4 = vperm.slane %v206_v42, 0  ;;  %v211_v5 = vperm.slane %v209_v53, 1  ;;  %v263_v7 = vperm.slane %v193_v33, 0 }
  0x29   : > { %v348_v6 = vsel %vm230_vm1, %v224_v59, %v347_v2  ;;  %v264_v9 = vperm.slane %v207_v46, 0  ;;  %v275_v10 = vsel %vm267_vm6, %v260_v0, %v259_v63  ;;  %v240_v11 = vsel %vm228_vm0, %v222_v57, %v221_v54 }
  0x2a   : > { %v349_v8 = vsel %vm232_vm2, %v225_v60, %v348_v6  ;;  %v265_v13 = vperm.slane %v208_v50, 0  ;;  %v276_v14 = vsel %vm228_vm0, %v261_v3, %v275_v10  ;;  %v241_v15 = vsel %vm230_vm1, %v223_v58, %v240_v11 }
  0x2b   : > { %v350_v12 = vsel %vm234_vm3, %v226_v61, %v349_v8  ;;  %v266_v17 = vperm.slane %v209_v53, 0  ;;  %v277_v18 = vsel %vm230_vm1, %v262_v4, %v276_v14  ;;  %v242_v19 = vsel %vm232_vm2, %v224_v59, %v241_v15 }
  0x2c   : > { %v351_v16 = vsel %vm236_vm4, %v227_v1, %v350_v12  ;;  %v278_v21 = vsel %vm232_vm2, %v263_v7, %v277_v18  ;;  %v243_v22 = vsel %vm234_vm3, %v225_v60, %v242_v19 }
  0x2d   : > { %v352_v20 = vsel %vm238_vm5, %v211_v5, %v351_v16  ;;  %v279_v23 = vsel %vm234_vm3, %v264_v9, %v278_v21  ;;  %v244_v24 = vsel %vm236_vm4, %v226_v61, %v243_v22 }
  0x2e   : > { %658 = vmatmul.msk.f32.gmra.mxu2 %vm282_vm7, %v352_v20  ;;  %v280_v25 = vsel %vm236_vm4, %v265_v13, %v279_v23  ;;  %v245_v26 = vsel %vm238_vm5, %v227_v1, %v244_v24 }
  0x2f   : > { %v281_v27 = vsel %vm238_vm5, %v266_v17, %v280_v25  ;;  %v250_v28 = vsel %vm248_vm8, %v211_v5, %v245_v26 }
  0x30   : > { %654 = vmatmul.msk.f32.gmra.mxu0 %vm282_vm7, %v281_v27  ;;  %656 = vmatmul.msk.f32.gmra.mxu1 %vm282_vm7, %v250_v28 }
  0xa3   : > { %v304_v29 = vpop.f32.mrf.mxu0  ;;  %v333_v30 = vpop.f32.mrf.mxu1 }
  0xa4   : > { %v334_v31 = vadd.f32 %v333_v30, %v304_v29 }
  0xa7   : > { %v374_v32 = vpop.f32.mrf.mxu2 }
  0xa8   : > { %v380_v33 = vadd.f32 %v374_v32, %v334_v31 }
  0xaa   : > { %v386_v34 = vrot.slane %v380_v33, 2  ;;  %v387_v35 = vrot.slane %v380_v33, 4  ;;  %382 = vst.msk [vmem:[%s967_s10] sm:$0xff] %vm282_vm7, %v380_v33  ;;  %v388_v36 = vrot.slane %v380_v33, 6  ;;  %v396_v37 = vperm.slane %v380_v33, 1 }
  0xab   : > { %v410_v41 = vperm.slane %v380_v33, 0 }
  0xac   : > { %v397_v38 = vperm.slane %v386_v34, 1  ;;  %v411_v39 = vperm.slane %v386_v34, 0  ;;  %v398_v40 = vperm.slane %v387_v35, 1  ;;  %v412_v45 = vperm.slane %v387_v35, 0 }
  0xad   : > { %v307_v43 = vpop.f32.mrf.mxu0  ;;  %v336_v44 = vpop.f32.mrf.mxu1  ;;  %v392_v46 = vperm.slane %v388_v36, 1  ;;  %v413_v55 = vperm.slane %v388_v36, 0 }
  0xae   : > { %v402_v42 = vsel %vm228_vm0, %v397_v38, %v396_v37  ;;  %v337_v47 = vadd.f32 %v336_v44, %v307_v43  ;;  %v418_v48 = vsel %vm267_vm6, %v411_v39, %v410_v41  ;;  %v475_v51 = vsel %vm267_vm6, %v397_v38, %v396_v37 }
  0xaf   : > { %v403_v49 = vsel %vm230_vm1, %v398_v40, %v402_v42  ;;  %v419_v54 = vsel %vm228_vm0, %v412_v45, %v418_v48  ;;  %v476_v56 = vsel %vm228_vm0, %v398_v40, %v475_v51 }
  0xb0   : > { %v408_v50 = vsel %vm248_vm8, %v392_v46, %v403_v49  ;;  %v420_v61 = vsel %vm230_vm1, %v413_v55, %v419_v54  ;;  %v477_v2 = vsel %vm230_vm1, %v392_v46, %v476_v56 }
  0xb1   : > { %v377_v52 = vpop.f32.mrf.mxu2  ;;  %449 = vst [vmem:[#allocation1] ss:$2 sm:$0xff] %v408_v50 }
  0xb2   : > { %v381_v53 = vadd.f32 %v377_v52, %v337_v47 }
  0xb4   : > { %v389_v57 = vrot.slane %v381_v53, 2  ;;  %v390_v58 = vrot.slane %v381_v53, 4  ;;  %v391_v59 = vrot.slane %v381_v53, 6  ;;  %v414_v60 = vperm.slane %v381_v53, 0  ;;  %383 = vst.msk [vmem:[%s967_s10 + $0x8] sm:$0xff] %vm282_vm7, %v381_v53 }
  0xb5   : > { %v399_v62 = vperm.slane %v381_v53, 1 }
  0xb6   : > { %v415_v63 = vperm.slane %v389_v57, 0  ;;  %v416_v0 = vperm.slane %v390_v58, 0  ;;  %v421_v1 = vsel %vm232_vm2, %v414_v60, %v420_v61  ;;  %v400_v3 = vperm.slane %v389_v57, 1 }
  0xb7   : > { %v401_v4 = vperm.slane %v390_v58, 1  ;;  %v478_v5 = vsel %vm232_vm2, %v399_v62, %v477_v2  ;;  %v417_v6 = vperm.slane %v391_v59, 0  ;;  %v393_v9 = vperm.slane %v391_v59, 1 }
  0xb8   : > { %v422_v7 = vsel %vm234_vm3, %v415_v63, %v421_v1  ;;  %v404_v10 = vsel %vm228_vm0, %v400_v3, %v399_v62  ;;  %v479_v11 = vsel %vm234_vm3, %v400_v3, %v478_v5 }
  0xb9   : > { %v423_v8 = vsel %vm236_vm4, %v416_v0, %v422_v7  ;;  %v405_v13 = vsel %vm230_vm1, %v401_v4, %v404_v10  ;;  %v480_v14 = vsel %vm236_vm4, %v401_v4, %v479_v11 }
  0xba   : > { %v424_v12 = vsel %vm238_vm5, %v417_v6, %v423_v8  ;;  %v409_v15 = vsel %vm248_vm8, %v393_v9, %v405_v13  ;;  %v481_v16 = vsel %vm238_vm5, %v393_v9, %v480_v14 }
  0xbb   : > { %659 = vmatmul.msk.f32.vlgmr.msra.gmra.mxu3 %vm282_vm7, %v424_v12  ;;  %451 = vst [vmem:[#allocation1 + $0x1] ss:$2 sm:$0xff] %v409_v15  ;;  %661 = vmatmul.msk.f32.vlgmr.msrb.gmra.mxu0 %vm282_vm7, %v481_v16 }
  0xc2   : > { %v452_v17 = vld.sshfl [vmem:[#allocation1] sm:$0xff pattern:$0x75316420] }
  0xc3   : > { %660 = vmatmul.msk.f32.vlgmr.msrb.gmra.mxu3 %vm282_vm7, %v452_v17 }
  0xc4   : > { %748 = shalt.err (!%p745_p3)
}
  0xc5   : > { %s817_s7 = smov 128   ;;  %s818_s9 = smov 8   ;;  %vm508_vm9 = vcmask 60416  }
  0xc6   : > { %673 = dma.vmem_to_hbm [thread:$0]  (%p879_p5), %s530_s24, 256, %s532_s25, %s512_s26, %s817_s7, %s817_s7, %s818_s9  }
  0xc7   : > { %s649_s10 = sshll.u32 %s964_s8, 3  ;;  %s672_s11 = sshll.u32 %s862_s16, 3 }
  0xc8   : > { %s545_s20 = scalar_lea.hbm %s1048_s3, %s672_s11  ;;  %s177_s27 = scalar_lea.vmem [#allocation4], %s649_s10 }
  0xc9   : > { %s546_s28 = sshll.u32 %s177_s27, 4  ;;  %s548_s29 = sshll.u32 %s545_s20, 4  ;;  %s547_s28 = int_to_ptr.vmem [resolvable:$true] %s546_s28  ;;  %s549_s29 = int_to_ptr.hbm [resolvable:$true] %s548_s29 }
  0xca   : > { %s517_s24 = scalar_lea.sflag [#allocation5], %s964_s8  ;;  %s763_s16 = sshra.s32 %s549_s29, 4  ;;  %s764_s16 = int_to_ptr.hbm [resolvable:$true] %s763_s16 }
  0xcb   : > { %s765_s25 = scalar_lea.hbm %s764_s16, 8  ;;  %s769_s4 = scalar_lea.hbm %s1048_s3, 16 }
  0xcc   : > { %p766_p4 = scmp.ne.s32.totalorder %s764_s16, %s765_s25  ;;  %p770_p9 = scmp.lt.s32.totalorder %s764_s16, %s1048_s3 }
  0xcd   : > { %p771_p10 = scmp.lt.s32.totalorder %s769_s4, %s765_s25 }
  0xce   : > { %p767_p7 = pnand %p766_p4, %p879_p5 }
  0xcf   : > { %p772_p11 = por %p771_p10, %p770_p9 }
  0xd0   : > { %p768_p8 = pneg %p767_p7 }
  0xd2   : > { %p773_p12 = pnand %p772_p11, %p768_p8 }
 0x138   : > { %v501_v21 = vpop.f32.mrf.mxu0 }
 0x13e   : > { %v444_v18 = vpop.f32.mrf.mxu3 }
 0x146   : > { %v472_v19 = vpop.f32.mrf.mxu3 }
 0x147   : > { %v473_v20 = vadd.f32 %v472_v19, %v444_v18 }
 0x149   : > { %v504_v22 = vadd.f32 %v501_v21, %v473_v20 }
 0x14b   : > { %v506_v23 = vrot.slane %v504_v22, 4  ;;  %509 = vst.msk [vmem:[%s177_s27] sm:$0xf] %vm508_vm9, %v504_v22 }
 0x14d   : > { %510 = vst.msk [vmem:[%s177_s27 + $0x4] sm:$0xf] %vm508_vm9, %v506_v23 }
 0x14e   : > { %776 = shalt.err (!%p773_p12)
}
 0x14f   : > { %s819_s8 = smov 64   ;;  %s820_s7 = smov 4  }
 0x150   : > { %674 = dma.vmem_to_hbm [thread:$0]  (%p879_p5), %s547_s28, 128, %s549_s29, %s517_s24, %s819_s8, %s819_s8, %s820_s7  }
 0x151 PF: > { %p684_p13 = scmp.ge.s32.totalorder %s815_s15, 2  ;;  %s563_s9 = sand.u32 1, %s803_s12  }
 0x152   : > { %s564_s10 = scalar_lea.sflag [#allocation3], %s563_s9 }
 0x153   : > { %p678_p0 = pnand %p684_p13, %p883_p6 }
 0x155   : > { %p679_p1 = pneg %p678_p0 }
 0x157   : > { %794 = dma.done.wait (%p679_p1), %s564_s10, 256  }
 0x158   : > { %796 = vsyncadd (%p679_p1), %s564_s10, 4294967040  ;;  %s574_s11 = scalar_lea.sflag [#allocation5], %s563_s9 }
 0x159   : > { %798 = dma.done.wait (%p679_p1), %s574_s11, 128  }
 0x15a   : > { %800 = vsyncadd (%p679_p1), %s574_s11, 4294967168  ;;  %p17_p5 = scmp.ge.s32.totalorder %s866_s18, 4   ;;  %s1051_s12 = smov %s807_s13 }
 0x15b   : > { %s1052_s13 = smov %s811_s14  ;;  %s1053_s14 = smov %s877_s21 }
 0x15c   : > { %s1054_s15 = smov %s866_s18  ;;  %19 = sbr.rel (!%p17_p5) target bundleno = 5 (0x5), region = 81 }
 0x161   :  { %580 = vsyncpa [#allocation3], 1 }
 0x162   :  { %582 = vsyncpa [#allocation3 + $0x1], 1 }
 0x163   :  { %583 = vsyncpa [#allocation5], 1 }
 0x164   :  { %585 = vsyncpa [#allocation5 + $0x1], 1 }

</bundles_post_ra>
